<compile_context>
chip_gen: v7x
topology: tpu7x:2x2x1
jax: 0.10.0
libtpu: 0.0.40
codegen_flags: <defaults>
</compile_context>

<pallas_src>
import jax
import jax.numpy as jnp
from jax.experimental import pallas as pl
from jax.experimental.pallas import tpu as pltpu

N_EMBD = 32
NUM_HEADS = 4
HEAD_SIZE = N_EMBD // NUM_HEADS
BLOCK_SIZE = 8          # T (sequence length / causal-mask size)
LN_EPS = 1e-5


def _layernorm(x, gamma, beta):
    mu = jnp.mean(x, axis=-1, keepdims=True)
    var = jnp.mean((x - mu) ** 2, axis=-1, keepdims=True)
    return (x - mu) * jax.lax.rsqrt(var + LN_EPS) * gamma + beta


def block_kernel(x_ref, w_in_ref, w2_ref, misc_ref, b1_ref, o_ref):
    """One program processes BB full sequences (BB*T rows) of the flattened batch.

    x_ref    : (BB*T, C)
    w_in_ref : (C, 8C)   = [wq*scale | wk | wv | wproj | w1]
    w2_ref   : (4C, C)
    misc_ref : (8, C)    = rows [ln1_g, ln1_b, ln2_g, ln2_b, bproj, b2, 0, 0]
    b1_ref   : (1, 4C)
    o_ref    : (BB*T, C)
    """
    C = N_EMBD
    H, D, T = NUM_HEADS, HEAD_SIZE, BLOCK_SIZE
    N = x_ref.shape[0]
    BB = N // T

    x = x_ref[...]                         # (N, C) f32
    W = w_in_ref[...]                      # (C, 8C)
    misc = misc_ref[...]                   # (8, C)
    ln1_g, ln1_b = misc[0:1, :], misc[1:2, :]
    ln2_g, ln2_b = misc[2:3, :], misc[3:4, :]
    bproj, b2 = misc[4:5, :], misc[5:6, :]
    b1 = b1_ref[...]                       # (1, 4C)

    # ---- LayerNorm 1 ----
    h = _layernorm(x, ln1_g, ln1_b)

    # ---- QKV: single matmul; attention scale already folded into Wq ----
    qkv = jnp.dot(h, W[:, :3 * C], preferred_element_type=jnp.float32)   # (N, 3C)

    # Additive causal bias, built once per program.
    row = jax.lax.broadcasted_iota(jnp.int32, (T, T), 0)
    col = jax.lax.broadcasted_iota(jnp.int32, (T, T), 1)
    att_bias = jnp.where(col <= row, 0.0, -1e30).astype(jnp.float32)[None]  # (1,T,T)

    # ---- Multi-head causal self-attention (batched over all BB sequences) ----
    ctx_heads = []
    for hh in range(H):
        lo = hh * D
        q_h = qkv[:, 0 * C + lo: 0 * C + lo + D].reshape(BB, T, D)
        k_h = qkv[:, 1 * C + lo: 1 * C + lo + D].reshape(BB, T, D)
        v_h = qkv[:, 2 * C + lo: 2 * C + lo + D].reshape(BB, T, D)
        s = jnp.einsum("btd,bsd->bts", q_h, k_h,
                       preferred_element_type=jnp.float32) + att_bias
        p = jax.nn.softmax(s, axis=-1)
        # dropout on attention weights: identity (eval mode)
        ctx_heads.append(jnp.einsum("bts,bsd->btd", p, v_h,
                                    preferred_element_type=jnp.float32))
    att = jnp.concatenate(ctx_heads, axis=-1).reshape(N, C)               # (N, C)
    att = jnp.dot(att, W[:, 3 * C:4 * C],
                  preferred_element_type=jnp.float32) + bproj

    x1 = x + att                            # first residual

    # ---- LayerNorm 2 + FeedForward ----
    h2 = _layernorm(x1, ln2_g, ln2_b)
    f = jnp.dot(h2, W[:, 4 * C:8 * C], preferred_element_type=jnp.float32) + b1
    f = jnp.maximum(f, 0.0)                 # ReLU
    f = jnp.dot(f, w2_ref[...], preferred_element_type=jnp.float32) + b2
    # dropout after FFN: identity (eval mode)

    o_ref[...] = x1 + f                     # second residual


def _pick_seqs_per_block(B, T, target_rows=256):
    """Smallest divisor BB of B such that BB*T >= min(target_rows, B*T)."""
    want = min(target_rows, B * T)
    for d in range(1, B + 1):
        if B % d == 0 and d * T >= want:
            return d
    return B


def _pack_params(p):
    C = N_EMBD
    scale = jnp.float32(C) ** -0.5          # reference scales by n_embd**-0.5
    w_in = jnp.concatenate(
        [p["wq"] * scale, p["wk"], p["wv"], p["wproj"], p["w1"]], axis=1)   # (C, 8C)
    misc = jnp.concatenate(
        [p["ln1_g"], p["ln1_b"], p["ln2_g"], p["ln2_b"],
         p["bproj"], p["b2"], jnp.zeros((2, C), jnp.float32)], axis=0)      # (8, C)
    return w_in, p["w2"], misc, p["b1"]


def block_forward(x, params):
    """x: (B, T, C) float32. params: dict of weights (see init_params)."""
    B, T, C = x.shape
    assert T == BLOCK_SIZE and C == N_EMBD

    w_in, w2, misc, b1 = _pack_params(params)

    BB = _pick_seqs_per_block(B, T)         # sequences per program
    rows = BB * T
    x2d = x.reshape(B * T, C)               # lane dim C=32 is fixed by the model;
                                            # rows (sublanes) carry the parallelism.

    out2d = pl.pallas_call(
        block_kernel,
        out_shape=jax.ShapeDtypeStruct((B * T, C), jnp.float32),
        grid=(B // BB,),
        in_specs=[
            pl.BlockSpec((rows, C), lambda i: (i, 0)),        # x rows
            pl.BlockSpec((C, 8 * C), lambda i: (0, 0)),       # packed weights
            pl.BlockSpec((4 * C, C), lambda i: (0, 0)),       # w2
            pl.BlockSpec((8, C), lambda i: (0, 0)),           # gammas/betas/biases
            pl.BlockSpec((1, 4 * C), lambda i: (0, 0)),       # b1
        ],
        out_specs=pl.BlockSpec((rows, C), lambda i: (i, 0)),
        compiler_params=pltpu.CompilerParams(
            dimension_semantics=("parallel",)),
    )(x2d, w_in, w2, misc, b1)

    return out2d.reshape(B, T, C)


def block_reference(x, p):
    """Pure-JAX reference for correctness checking (mirrors the PyTorch module)."""
    def ln(x, g, b):
        mu = jnp.mean(x, axis=-1, keepdims=True)
        var = jnp.mean((x - mu) ** 2, axis=-1, keepdims=True)
        return (x - mu) * jax.lax.rsqrt(var + LN_EPS) * g + b

    B, T, C = x.shape
    h = ln(x, p["ln1_g"][0], p["ln1_b"][0])
    q = h @ p["wq"]; k = h @ p["wk"]; v = h @ p["wv"]
    scale = C ** -0.5
    mask = jnp.tril(jnp.ones((T, T), bool))
    outs = []
    for hh in range(NUM_HEADS):
        lo, hi = hh * HEAD_SIZE, (hh + 1) * HEAD_SIZE
        wei = jnp.einsum("btd,bsd->bts", q[..., lo:hi], k[..., lo:hi]) * scale
        wei = jnp.where(mask, wei, -jnp.inf)
        wei = jax.nn.softmax(wei, axis=-1)
        outs.append(jnp.einsum("bts,bsd->btd", wei, v[..., lo:hi]))
    att = jnp.concatenate(outs, axis=-1) @ p["wproj"] + p["bproj"][0]
    x1 = x + att
    h2 = ln(x1, p["ln2_g"][0], p["ln2_b"][0])
    f = jnp.maximum(h2 @ p["w1"] + p["b1"][0], 0.0) @ p["w2"] + p["b2"][0]
    return x1 + f


def init_params(key):
    C = N_EMBD
    ks = jax.random.split(key, 8)
    s = 0.05
    return {
        "ln1_g": jnp.ones((1, C), jnp.float32),
        "ln1_b": jnp.zeros((1, C), jnp.float32),
        "wq": s * jax.random.normal(ks[0], (C, C), jnp.float32),
        "wk": s * jax.random.normal(ks[1], (C, C), jnp.float32),
        "wv": s * jax.random.normal(ks[2], (C, C), jnp.float32),
        "wproj": s * jax.random.normal(ks[3], (C, C), jnp.float32),
        "bproj": s * jax.random.normal(ks[4], (1, C), jnp.float32),
        "ln2_g": jnp.ones((1, C), jnp.float32),
        "ln2_b": jnp.zeros((1, C), jnp.float32),
        "w1": s * jax.random.normal(ks[5], (C, 4 * C), jnp.float32),
        "b1": jnp.zeros((1, 4 * C), jnp.float32),
        "w2": s * jax.random.normal(ks[6], (4 * C, C), jnp.float32),
        "b2": jnp.zeros((1, C), jnp.float32),
    }


if __name__ == "__main__":
    key = jax.random.PRNGKey(0)
    kx, kp = jax.random.split(key)

    B, T, C = 2, BLOCK_SIZE, N_EMBD          # (2, 8, 32)
    x = jax.random.normal(kx, (B, T, C), jnp.float32)
    params = init_params(kp)

    out = block_forward(x, params)
    out = jax.block_until_ready(out)

    ref = block_reference(x, params)
    assert out.shape == (B, T, C)
    assert jnp.allclose(out, ref, atol=1e-3, rtol=1e-3), "mismatch vs reference"

    print("KERNEL_OK")
</pallas_src>

<mosaic_0001>
module attributes {stable_mosaic.version = 11 : i64} {
  func.func @block_kernel(%arg0: i32, %arg1: memref<16x32xf32, #tpu.memory_space<vmem>>, %arg2: memref<32x256xf32, #tpu.memory_space<vmem>>, %arg3: memref<128x32xf32, #tpu.memory_space<vmem>>, %arg4: memref<8x32xf32, #tpu.memory_space<vmem>>, %arg5: memref<1x128xf32, #tpu.memory_space<vmem>>, %arg6: memref<16x32xf32, #tpu.memory_space<vmem>>) attributes {dimension_semantics = [#tpu.dimension_semantics<parallel>], iteration_bounds = array<i64: 1>, scalar_prefetch = 0 : i64, scratch_operands = 0 : i64, tpu.core_type = #tpu.core_type<tc>, window_params = [{transform_indices = @transform_0, window_bounds = array<i64: 16, 32>}, {pipeline_mode = #tpu.pipeline_mode<synchronous>, transform_indices = @transform_1, window_bounds = array<i64: 32, 256>}, {pipeline_mode = #tpu.pipeline_mode<synchronous>, transform_indices = @transform_2, window_bounds = array<i64: 128, 32>}, {pipeline_mode = #tpu.pipeline_mode<synchronous>, transform_indices = @transform_3, window_bounds = array<i64: 8, 32>}, {pipeline_mode = #tpu.pipeline_mode<synchronous>, transform_indices = @transform_4, window_bounds = array<i64: 1, 128>}, {transform_indices = @transform_5, window_bounds = array<i64: 16, 32>}]} {
    %c0 = arith.constant 0 : index
    %c0_0 = arith.constant 0 : index
    %0 = vector.load %arg1[%c0, %c0_0] : memref<16x32xf32, #tpu.memory_space<vmem>>, vector<16x32xf32>
    %c0_1 = arith.constant 0 : index
    %c0_2 = arith.constant 0 : index
    %1 = vector.load %arg2[%c0_1, %c0_2] : memref<32x256xf32, #tpu.memory_space<vmem>>, vector<32x256xf32>
    %c0_3 = arith.constant 0 : index
    %c0_4 = arith.constant 0 : index
    %2 = vector.load %arg4[%c0_3, %c0_4] : memref<8x32xf32, #tpu.memory_space<vmem>>, vector<8x32xf32>
    %3 = vector.extract_strided_slice %2 {offsets = [0, 0], sizes = [1, 32], strides = [1, 1]} : vector<8x32xf32> to vector<1x32xf32>
    %4 = vector.extract_strided_slice %2 {offsets = [1, 0], sizes = [1, 32], strides = [1, 1]} : vector<8x32xf32> to vector<1x32xf32>
    %5 = vector.extract_strided_slice %2 {offsets = [2, 0], sizes = [1, 32], strides = [1, 1]} : vector<8x32xf32> to vector<1x32xf32>
    %6 = vector.extract_strided_slice %2 {offsets = [3, 0], sizes = [1, 32], strides = [1, 1]} : vector<8x32xf32> to vector<1x32xf32>
    %7 = vector.extract_strided_slice %2 {offsets = [4, 0], sizes = [1, 32], strides = [1, 1]} : vector<8x32xf32> to vector<1x32xf32>
    %8 = vector.extract_strided_slice %2 {offsets = [5, 0], sizes = [1, 32], strides = [1, 1]} : vector<8x32xf32> to vector<1x32xf32>
    %c0_5 = arith.constant 0 : index
    %c0_6 = arith.constant 0 : index
    %9 = vector.load %arg5[%c0_5, %c0_6] : memref<1x128xf32, #tpu.memory_space<vmem>>, vector<1x128xf32>
    %cst = arith.constant dense<0.000000e+00> : vector<16xf32>
    %10 = vector.multi_reduction <add>, %0, %cst [1] : vector<16x32xf32> to vector<16xf32>
    %11 = vector.shape_cast %10 : vector<16xf32> to vector<16x1xf32>
    %cst_7 = arith.constant 3.200000e+01 : f32
    %12 = vector.broadcast %cst_7 : f32 to vector<16x1xf32>
    %13 = arith.divf %11, %12 : vector<16x1xf32>
    %14 = vector.broadcast %13 : vector<16x1xf32> to vector<16x32xf32>
    %15 = arith.subf %0, %14 : vector<16x32xf32>
    %16 = arith.mulf %15, %15 : vector<16x32xf32>
    %cst_8 = arith.constant dense<0.000000e+00> : vector<16xf32>
    %17 = vector.multi_reduction <add>, %16, %cst_8 [1] : vector<16x32xf32> to vector<16xf32>
    %18 = vector.shape_cast %17 : vector<16xf32> to vector<16x1xf32>
    %cst_9 = arith.constant 3.200000e+01 : f32
    %19 = vector.broadcast %cst_9 : f32 to vector<16x1xf32>
    %20 = arith.divf %18, %19 : vector<16x1xf32>
    %21 = vector.broadcast %13 : vector<16x1xf32> to vector<16x32xf32>
    %22 = arith.subf %0, %21 : vector<16x32xf32>
    %cst_10 = arith.constant 9.99999974E-6 : f32
    %23 = vector.broadcast %cst_10 : f32 to vector<16x1xf32>
    %24 = arith.addf %20, %23 : vector<16x1xf32>
    %25 = math.rsqrt %24 : vector<16x1xf32>
    %26 = vector.broadcast %25 : vector<16x1xf32> to vector<16x32xf32>
    %27 = arith.mulf %22, %26 : vector<16x32xf32>
    %28 = vector.broadcast %3 : vector<1x32xf32> to vector<16x32xf32>
    %29 = arith.mulf %27, %28 : vector<16x32xf32>
    %30 = vector.broadcast %4 : vector<1x32xf32> to vector<16x32xf32>
    %31 = arith.addf %29, %30 : vector<16x32xf32>
    %32 = vector.extract_strided_slice %1 {offsets = [0, 0], sizes = [32, 96], strides = [1, 1]} : vector<32x256xf32> to vector<32x96xf32>
    %cst_11 = arith.constant dense<0.000000e+00> : vector<16x96xf32>
    %33 = tpu.matmul %31, %32, %cst_11 {dimension_numbers = #tpu.dot_dimension_numbers<[1], [0], [0], [1], [0, 0, 1, 1], [], []>} : vector<16x32xf32>, vector<32x96xf32>, vector<16x96xf32> -> vector<16x96xf32>
    %34 = tpu.iota {dimensions = array<i32: 0>} : vector<8x8xi32>
    %35 = tpu.iota {dimensions = array<i32: 1>} : vector<8x8xi32>
    %36 = arith.cmpi sle, %35, %34 : vector<8x8xi32>
    %cst_12 = arith.constant 0.000000e+00 : f32
    %cst_13 = arith.constant -1.000000e+30 : f32
    %37 = vector.broadcast %cst_12 : f32 to vector<8x8xf32>
    %38 = vector.broadcast %cst_13 : f32 to vector<8x8xf32>
    %39 = arith.select %36, %37, %38 : vector<8x8xi1>, vector<8x8xf32>
    %40 = vector.shape_cast %39 : vector<8x8xf32> to vector<1x8x8xf32>
    %41 = vector.extract_strided_slice %33 {offsets = [0, 0], sizes = [16, 8], strides = [1, 1]} : vector<16x96xf32> to vector<16x8xf32>
    %42 = vector.shape_cast %41 : vector<16x8xf32> to vector<2x8x8xf32>
    %43 = vector.extract_strided_slice %33 {offsets = [0, 32], sizes = [16, 8], strides = [1, 1]} : vector<16x96xf32> to vector<16x8xf32>
    %44 = vector.shape_cast %43 : vector<16x8xf32> to vector<2x8x8xf32>
    %45 = vector.extract_strided_slice %33 {offsets = [0, 64], sizes = [16, 8], strides = [1, 1]} : vector<16x96xf32> to vector<16x8xf32>
    %46 = vector.shape_cast %45 : vector<16x8xf32> to vector<2x8x8xf32>
    "tpu.trace_start"() <{level = 10 : i32, message = "btd,bsd->bts"}> : () -> ()
    %cst_14 = arith.constant dense<0.000000e+00> : vector<2x8x8xf32>
    %47 = tpu.matmul %42, %44, %cst_14 {dimension_numbers = #tpu.dot_dimension_numbers<[2], [2], [1], [1], [0, 0, 0, 1, 1, 1], [0], [0]>} : vector<2x8x8xf32>, vector<2x8x8xf32>, vector<2x8x8xf32> -> vector<2x8x8xf32>
    "tpu.trace_stop"() : () -> ()
    %48 = vector.broadcast %40 : vector<1x8x8xf32> to vector<2x8x8xf32>
    %49 = arith.addf %47, %48 : vector<2x8x8xf32>
    %cst_15 = arith.constant dense<0xFF800000> : vector<2x8xf32>
    %50 = vector.multi_reduction <maximumf>, %49, %cst_15 [2] : vector<2x8x8xf32> to vector<2x8xf32>
    %cst_16 = arith.constant 0xFF800000 : f32
    %51 = vector.broadcast %cst_16 : f32 to vector<2x8xf32>
    %52 = arith.maximumf %51, %50 : vector<2x8xf32>
    %53 = vector.shape_cast %52 : vector<2x8xf32> to vector<2x8x1xf32>
    %54 = vector.broadcast %53 : vector<2x8x1xf32> to vector<2x8x8xf32>
    %55 = arith.subf %49, %54 : vector<2x8x8xf32>
    %56 = math.exp %55 : vector<2x8x8xf32>
    %cst_17 = arith.constant dense<0.000000e+00> : vector<2x8xf32>
    %57 = vector.multi_reduction <add>, %56, %cst_17 [2] : vector<2x8x8xf32> to vector<2x8xf32>
    %58 = vector.shape_cast %57 : vector<2x8xf32> to vector<2x8x1xf32>
    %59 = vector.broadcast %58 : vector<2x8x1xf32> to vector<2x8x8xf32>
    %60 = arith.divf %56, %59 : vector<2x8x8xf32>
    "tpu.trace_start"() <{level = 10 : i32, message = "bts,bsd->btd"}> : () -> ()
    %cst_18 = arith.constant dense<0.000000e+00> : vector<2x8x8xf32>
    %61 = tpu.matmul %60, %46, %cst_18 {dimension_numbers = #tpu.dot_dimension_numbers<[2], [1], [1], [2], [0, 0, 0, 1, 1, 2], [0], [0]>} : vector<2x8x8xf32>, vector<2x8x8xf32>, vector<2x8x8xf32> -> vector<2x8x8xf32>
    "tpu.trace_stop"() : () -> ()
    %62 = vector.extract_strided_slice %33 {offsets = [0, 8], sizes = [16, 8], strides = [1, 1]} : vector<16x96xf32> to vector<16x8xf32>
    %63 = vector.shape_cast %62 : vector<16x8xf32> to vector<2x8x8xf32>
    %64 = vector.extract_strided_slice %33 {offsets = [0, 40], sizes = [16, 8], strides = [1, 1]} : vector<16x96xf32> to vector<16x8xf32>
    %65 = vector.shape_cast %64 : vector<16x8xf32> to vector<2x8x8xf32>
    %66 = vector.extract_strided_slice %33 {offsets = [0, 72], sizes = [16, 8], strides = [1, 1]} : vector<16x96xf32> to vector<16x8xf32>
    %67 = vector.shape_cast %66 : vector<16x8xf32> to vector<2x8x8xf32>
    "tpu.trace_start"() <{level = 10 : i32, message = "btd,bsd->bts"}> : () -> ()
    %cst_19 = arith.constant dense<0.000000e+00> : vector<2x8x8xf32>
    %68 = tpu.matmul %63, %65, %cst_19 {dimension_numbers = #tpu.dot_dimension_numbers<[2], [2], [1], [1], [0, 0, 0, 1, 1, 1], [0], [0]>} : vector<2x8x8xf32>, vector<2x8x8xf32>, vector<2x8x8xf32> -> vector<2x8x8xf32>
    "tpu.trace_stop"() : () -> ()
    %69 = vector.broadcast %40 : vector<1x8x8xf32> to vector<2x8x8xf32>
    %70 = arith.addf %68, %69 : vector<2x8x8xf32>
    %cst_20 = arith.constant dense<0xFF800000> : vector<2x8xf32>
    %71 = vector.multi_reduction <maximumf>, %70, %cst_20 [2] : vector<2x8x8xf32> to vector<2x8xf32>
    %cst_21 = arith.constant 0xFF800000 : f32
    %72 = vector.broadcast %cst_21 : f32 to vector<2x8xf32>
    %73 = arith.maximumf %72, %71 : vector<2x8xf32>
    %74 = vector.shape_cast %73 : vector<2x8xf32> to vector<2x8x1xf32>
    %75 = vector.broadcast %74 : vector<2x8x1xf32> to vector<2x8x8xf32>
    %76 = arith.subf %70, %75 : vector<2x8x8xf32>
    %77 = math.exp %76 : vector<2x8x8xf32>
    %cst_22 = arith.constant dense<0.000000e+00> : vector<2x8xf32>
    %78 = vector.multi_reduction <add>, %77, %cst_22 [2] : vector<2x8x8xf32> to vector<2x8xf32>
    %79 = vector.shape_cast %78 : vector<2x8xf32> to vector<2x8x1xf32>
    %80 = vector.broadcast %79 : vector<2x8x1xf32> to vector<2x8x8xf32>
    %81 = arith.divf %77, %80 : vector<2x8x8xf32>
    "tpu.trace_start"() <{level = 10 : i32, message = "bts,bsd->btd"}> : () -> ()
    %cst_23 = arith.constant dense<0.000000e+00> : vector<2x8x8xf32>
    %82 = tpu.matmul %81, %67, %cst_23 {dimension_numbers = #tpu.dot_dimension_numbers<[2], [1], [1], [2], [0, 0, 0, 1, 1, 2], [0], [0]>} : vector<2x8x8xf32>, vector<2x8x8xf32>, vector<2x8x8xf32> -> vector<2x8x8xf32>
    "tpu.trace_stop"() : () -> ()
    %83 = vector.extract_strided_slice %33 {offsets = [0, 16], sizes = [16, 8], strides = [1, 1]} : vector<16x96xf32> to vector<16x8xf32>
    %84 = vector.shape_cast %83 : vector<16x8xf32> to vector<2x8x8xf32>
    %85 = vector.extract_strided_slice %33 {offsets = [0, 48], sizes = [16, 8], strides = [1, 1]} : vector<16x96xf32> to vector<16x8xf32>
    %86 = vector.shape_cast %85 : vector<16x8xf32> to vector<2x8x8xf32>
    %87 = vector.extract_strided_slice %33 {offsets = [0, 80], sizes = [16, 8], strides = [1, 1]} : vector<16x96xf32> to vector<16x8xf32>
    %88 = vector.shape_cast %87 : vector<16x8xf32> to vector<2x8x8xf32>
    "tpu.trace_start"() <{level = 10 : i32, message = "btd,bsd->bts"}> : () -> ()
    %cst_24 = arith.constant dense<0.000000e+00> : vector<2x8x8xf32>
    %89 = tpu.matmul %84, %86, %cst_24 {dimension_numbers = #tpu.dot_dimension_numbers<[2], [2], [1], [1], [0, 0, 0, 1, 1, 1], [0], [0]>} : vector<2x8x8xf32>, vector<2x8x8xf32>, vector<2x8x8xf32> -> vector<2x8x8xf32>
    "tpu.trace_stop"() : () -> ()
    %90 = vector.broadcast %40 : vector<1x8x8xf32> to vector<2x8x8xf32>
    %91 = arith.addf %89, %90 : vector<2x8x8xf32>
    %cst_25 = arith.constant dense<0xFF800000> : vector<2x8xf32>
    %92 = vector.multi_reduction <maximumf>, %91, %cst_25 [2] : vector<2x8x8xf32> to vector<2x8xf32>
    %cst_26 = arith.constant 0xFF800000 : f32
    %93 = vector.broadcast %cst_26 : f32 to vector<2x8xf32>
    %94 = arith.maximumf %93, %92 : vector<2x8xf32>
    %95 = vector.shape_cast %94 : vector<2x8xf32> to vector<2x8x1xf32>
    %96 = vector.broadcast %95 : vector<2x8x1xf32> to vector<2x8x8xf32>
    %97 = arith.subf %91, %96 : vector<2x8x8xf32>
    %98 = math.exp %97 : vector<2x8x8xf32>
    %cst_27 = arith.constant dense<0.000000e+00> : vector<2x8xf32>
    %99 = vector.multi_reduction <add>, %98, %cst_27 [2] : vector<2x8x8xf32> to vector<2x8xf32>
    %100 = vector.shape_cast %99 : vector<2x8xf32> to vector<2x8x1xf32>
    %101 = vector.broadcast %100 : vector<2x8x1xf32> to vector<2x8x8xf32>
    %102 = arith.divf %98, %101 : vector<2x8x8xf32>
    "tpu.trace_start"() <{level = 10 : i32, message = "bts,bsd->btd"}> : () -> ()
    %cst_28 = arith.constant dense<0.000000e+00> : vector<2x8x8xf32>
    %103 = tpu.matmul %102, %88, %cst_28 {dimension_numbers = #tpu.dot_dimension_numbers<[2], [1], [1], [2], [0, 0, 0, 1, 1, 2], [0], [0]>} : vector<2x8x8xf32>, vector<2x8x8xf32>, vector<2x8x8xf32> -> vector<2x8x8xf32>
    "tpu.trace_stop"() : () -> ()
    %104 = vector.extract_strided_slice %33 {offsets = [0, 24], sizes = [16, 8], strides = [1, 1]} : vector<16x96xf32> to vector<16x8xf32>
    %105 = vector.shape_cast %104 : vector<16x8xf32> to vector<2x8x8xf32>
    %106 = vector.extract_strided_slice %33 {offsets = [0, 56], sizes = [16, 8], strides = [1, 1]} : vector<16x96xf32> to vector<16x8xf32>
    %107 = vector.shape_cast %106 : vector<16x8xf32> to vector<2x8x8xf32>
    %108 = vector.extract_strided_slice %33 {offsets = [0, 88], sizes = [16, 8], strides = [1, 1]} : vector<16x96xf32> to vector<16x8xf32>
    %109 = vector.shape_cast %108 : vector<16x8xf32> to vector<2x8x8xf32>
    "tpu.trace_start"() <{level = 10 : i32, message = "btd,bsd->bts"}> : () -> ()
    %cst_29 = arith.constant dense<0.000000e+00> : vector<2x8x8xf32>
    %110 = tpu.matmul %105, %107, %cst_29 {dimension_numbers = #tpu.dot_dimension_numbers<[2], [2], [1], [1], [0, 0, 0, 1, 1, 1], [0], [0]>} : vector<2x8x8xf32>, vector<2x8x8xf32>, vector<2x8x8xf32> -> vector<2x8x8xf32>
    "tpu.trace_stop"() : () -> ()
    %111 = vector.broadcast %40 : vector<1x8x8xf32> to vector<2x8x8xf32>
    %112 = arith.addf %110, %111 : vector<2x8x8xf32>
    %cst_30 = arith.constant dense<0xFF800000> : vector<2x8xf32>
    %113 = vector.multi_reduction <maximumf>, %112, %cst_30 [2] : vector<2x8x8xf32> to vector<2x8xf32>
    %cst_31 = arith.constant 0xFF800000 : f32
    %114 = vector.broadcast %cst_31 : f32 to vector<2x8xf32>
    %115 = arith.maximumf %114, %113 : vector<2x8xf32>
    %116 = vector.shape_cast %115 : vector<2x8xf32> to vector<2x8x1xf32>
    %117 = vector.broadcast %116 : vector<2x8x1xf32> to vector<2x8x8xf32>
    %118 = arith.subf %112, %117 : vector<2x8x8xf32>
    %119 = math.exp %118 : vector<2x8x8xf32>
    %cst_32 = arith.constant dense<0.000000e+00> : vector<2x8xf32>
    %120 = vector.multi_reduction <add>, %119, %cst_32 [2] : vector<2x8x8xf32> to vector<2x8xf32>
    %121 = vector.shape_cast %120 : vector<2x8xf32> to vector<2x8x1xf32>
    %122 = vector.broadcast %121 : vector<2x8x1xf32> to vector<2x8x8xf32>
    %123 = arith.divf %119, %122 : vector<2x8x8xf32>
    "tpu.trace_start"() <{level = 10 : i32, message = "bts,bsd->btd"}> : () -> ()
    %cst_33 = arith.constant dense<0.000000e+00> : vector<2x8x8xf32>
    %124 = tpu.matmul %123, %109, %cst_33 {dimension_numbers = #tpu.dot_dimension_numbers<[2], [1], [1], [2], [0, 0, 0, 1, 1, 2], [0], [0]>} : vector<2x8x8xf32>, vector<2x8x8xf32>, vector<2x8x8xf32> -> vector<2x8x8xf32>
    "tpu.trace_stop"() : () -> ()
    %125 = tpu.concatenate %61, %82, %103, %124 in 2 : vector<2x8x8xf32>, vector<2x8x8xf32>, vector<2x8x8xf32>, vector<2x8x8xf32> -> vector<2x8x32xf32>
    %126 = vector.shape_cast %125 : vector<2x8x32xf32> to vector<16x32xf32>
    %127 = vector.extract_strided_slice %1 {offsets = [0, 96], sizes = [32, 32], strides = [1, 1]} : vector<32x256xf32> to vector<32x32xf32>
    %cst_34 = arith.constant dense<0.000000e+00> : vector<16x32xf32>
    %128 = tpu.matmul %126, %127, %cst_34 {dimension_numbers = #tpu.dot_dimension_numbers<[1], [0], [0], [1], [0, 0, 1, 1], [], []>} : vector<16x32xf32>, vector<32x32xf32>, vector<16x32xf32> -> vector<16x32xf32>
    %129 = vector.broadcast %7 : vector<1x32xf32> to vector<16x32xf32>
    %130 = arith.addf %128, %129 : vector<16x32xf32>
    %131 = arith.addf %0, %130 : vector<16x32xf32>
    %cst_35 = arith.constant dense<0.000000e+00> : vector<16xf32>
    %132 = vector.multi_reduction <add>, %131, %cst_35 [1] : vector<16x32xf32> to vector<16xf32>
    %133 = vector.shape_cast %132 : vector<16xf32> to vector<16x1xf32>
    %cst_36 = arith.constant 3.200000e+01 : f32
    %134 = vector.broadcast %cst_36 : f32 to vector<16x1xf32>
    %135 = arith.divf %133, %134 : vector<16x1xf32>
    %136 = vector.broadcast %135 : vector<16x1xf32> to vector<16x32xf32>
    %137 = arith.subf %131, %136 : vector<16x32xf32>
    %138 = arith.mulf %137, %137 : vector<16x32xf32>
    %cst_37 = arith.constant dense<0.000000e+00> : vector<16xf32>
    %139 = vector.multi_reduction <add>, %138, %cst_37 [1] : vector<16x32xf32> to vector<16xf32>
    %140 = vector.shape_cast %139 : vector<16xf32> to vector<16x1xf32>
    %cst_38 = arith.constant 3.200000e+01 : f32
    %141 = vector.broadcast %cst_38 : f32 to vector<16x1xf32>
    %142 = arith.divf %140, %141 : vector<16x1xf32>
    %143 = vector.broadcast %135 : vector<16x1xf32> to vector<16x32xf32>
    %144 = arith.subf %131, %143 : vector<16x32xf32>
    %cst_39 = arith.constant 9.99999974E-6 : f32
    %145 = vector.broadcast %cst_39 : f32 to vector<16x1xf32>
    %146 = arith.addf %142, %145 : vector<16x1xf32>
    %147 = math.rsqrt %146 : vector<16x1xf32>
    %148 = vector.broadcast %147 : vector<16x1xf32> to vector<16x32xf32>
    %149 = arith.mulf %144, %148 : vector<16x32xf32>
    %150 = vector.broadcast %5 : vector<1x32xf32> to vector<16x32xf32>
    %151 = arith.mulf %149, %150 : vector<16x32xf32>
    %152 = vector.broadcast %6 : vector<1x32xf32> to vector<16x32xf32>
    %153 = arith.addf %151, %152 : vector<16x32xf32>
    %154 = vector.extract_strided_slice %1 {offsets = [0, 128], sizes = [32, 128], strides = [1, 1]} : vector<32x256xf32> to vector<32x128xf32>
    %cst_40 = arith.constant dense<0.000000e+00> : vector<16x128xf32>
    %155 = tpu.matmul %153, %154, %cst_40 {dimension_numbers = #tpu.dot_dimension_numbers<[1], [0], [0], [1], [0, 0, 1, 1], [], []>} : vector<16x32xf32>, vector<32x128xf32>, vector<16x128xf32> -> vector<16x128xf32>
    %156 = vector.broadcast %9 : vector<1x128xf32> to vector<16x128xf32>
    %157 = arith.addf %155, %156 : vector<16x128xf32>
    %cst_41 = arith.constant 0.000000e+00 : f32
    %158 = vector.broadcast %cst_41 : f32 to vector<16x128xf32>
    %159 = arith.maximumf %157, %158 : vector<16x128xf32>
    %c0_42 = arith.constant 0 : index
    %c0_43 = arith.constant 0 : index
    %160 = vector.load %arg3[%c0_42, %c0_43] : memref<128x32xf32, #tpu.memory_space<vmem>>, vector<128x32xf32>
    %cst_44 = arith.constant dense<0.000000e+00> : vector<16x32xf32>
    %161 = tpu.matmul %159, %160, %cst_44 {dimension_numbers = #tpu.dot_dimension_numbers<[1], [0], [0], [1], [0, 0, 1, 1], [], []>} : vector<16x128xf32>, vector<128x32xf32>, vector<16x32xf32> -> vector<16x32xf32>
    %162 = vector.broadcast %8 : vector<1x32xf32> to vector<16x32xf32>
    %163 = arith.addf %161, %162 : vector<16x32xf32>
    %164 = arith.addf %131, %163 : vector<16x32xf32>
    %c0_45 = arith.constant 0 : index
    %c0_46 = arith.constant 0 : index
    %165 = vector.load %arg6[%c0_45, %c0_46] : memref<16x32xf32, #tpu.memory_space<vmem>>, vector<16x32xf32>
    tpu.vector_store %arg6[%c0_45, %c0_46], %164 {strides = array<i32>} : memref<16x32xf32, #tpu.memory_space<vmem>>, vector<16x32xf32>,
    return
  }
  func.func @transform_0(%arg0: i32) -> (i32, i32) {
    %c0_i32 = arith.constant 0 : i32
    %c0_i32_0 = arith.constant 0 : i32
    return %arg0, %c0_i32 : i32, i32
  }
  func.func @transform_1(%arg0: i32) -> (i32, i32) {
    %c0_i32 = arith.constant 0 : i32
    %c0_i32_0 = arith.constant 0 : i32
    %c0_i32_1 = arith.constant 0 : i32
    return %c0_i32, %c0_i32_0 : i32, i32
  }
  func.func @transform_2(%arg0: i32) -> (i32, i32) {
    %c0_i32 = arith.constant 0 : i32
    %c0_i32_0 = arith.constant 0 : i32
    %c0_i32_1 = arith.constant 0 : i32
    return %c0_i32, %c0_i32_0 : i32, i32
  }
  func.func @transform_3(%arg0: i32) -> (i32, i32) {
    %c0_i32 = arith.constant 0 : i32
    %c0_i32_0 = arith.constant 0 : i32
    %c0_i32_1 = arith.constant 0 : i32
    return %c0_i32, %c0_i32_0 : i32, i32
  }
  func.func @transform_4(%arg0: i32) -> (i32, i32) {
    %c0_i32 = arith.constant 0 : i32
    %c0_i32_0 = arith.constant 0 : i32
    %c0_i32_1 = arith.constant 0 : i32
    return %c0_i32, %c0_i32_0 : i32, i32
  }
  func.func @transform_5(%arg0: i32) -> (i32, i32) {
    %c0_i32 = arith.constant 0 : i32
    %c0_i32_0 = arith.constant 0 : i32
    return %arg0, %c0_i32 : i32, i32
  }
}

</mosaic_0001>

<bundles_post_ra>
// kernel: tpu_custom_call.1
= control target key start
LH: loop header
LB: loop body
LE: loop exit
PB: predicated region body
PF: predicated region fallthrough
CT: control target
= control target key end

     0   :  { %vm33_vm0 = vcmask 261120   ;;  %s2626_s0 = inlined_call_operand.vmem [shape: f32[16,32], index: 0, kind: input, shape index: {}]   ;;  %s2627_s1 = inlined_call_operand.vmem [shape: f32[32,256], index: 1, kind: input, shape index: {}]   ;;  %s2628_s2 = inlined_call_operand.vmem [shape: f32[128,32], index: 2, kind: input, shape index: {}]   ;;  %s2629_s3 = inlined_call_operand.vmem [shape: f32[8,32], index: 3, kind: input, shape index: {}]   ;;  %s2630_s4 = inlined_call_operand.vmem [shape: f32[1,128], index: 4, kind: input, shape index: {}]   ;;  %s2631_s5 = inlined_call_operand.hbm [shape: f32[16,32], index: 5, kind: output, shape index: {}]  }
   0x1   :  { %v2306_v0 = vld [vmem:[%s2626_s0] sm:$0xff]  ;;  %v2311_v1 = vld [vmem:[%s2626_s0 + $0x8] sm:$0xff] }
   0x2   :  { %10 = vsyncpa [#allocation3], 0  ;;  %v34_v2 = vsel %vm33_vm0, %v2306_v0, 0.0  ;;  %v37_v3 = vsel %vm33_vm0, %v2311_v1, 0.0  ;;  %v2324_v14 = vld [vmem:[%s2627_s1] sm:$0xff]  ;;  %v2329_v15 = vld [vmem:[%s2627_s1 + $0x10] sm:$0xff]  ;;  %v61_v23 = vlaneseq }
   0x3   :  { %35 = vadd.xlane.f32.xlu0 %v34_v2  ;;  %v2334_v16 = vld [vmem:[%s2627_s1 + $0x20] sm:$0xff]  ;;  %v2179_v17 = vpack.i.bf16 %v2329_v15, %v2324_v14  ;;  %v2103_v18 = vpack.c.bf16 %v2329_v15, %v2324_v14  ;;  %v2343_v19 = vld [vmem:[%s2627_s1 + $0x30] sm:$0xff]  ;;  %v2253_v42 = vmov 0.0   ;;  %vm2254_vm1 = vmmov 0   ;;  %s2257_s6 = smov 64   ;;  %s2258_s7 = smov 88  }
   0x4   :  { %v2107_v20 = vpack.c.bf16 %v2343_v19, %v2334_v16  ;;  %v2347_v27 = vshrl.u32 %v61_v23, 7  ;;  %v2353_v30 = vld [vmem:[%s2629_s3] sm:$0xff]  ;;  %1976 = vmatprep.subr.mxu0 %v2253_v42  ;;  %1978 = vmatprep.mubr.msk.f32.mxu0 %vm2254_vm1, %v2253_v42  ;;  %s2255_s3 = smov 96   ;;  %vm163_vm2 = vcmask 64512   ;;  %v157_v47 = vand.u32 127, %v61_v23  ;;  %s2259_s8 = smov 120  }
   0x5   :  { %2104 = vmatprep.subr.bf16.mxu1 %v2103_v18  ;;  %v2256_v48 = vmov -1e+30   ;;  %s2260_s9 = smov 56   ;;  %s2261_s10 = smov 80   ;;  %vm1508_vm4 = vcmask 195584   ;;  %vm1505_vm5 = vcmask 130048  }
   0x6   :  { %2106 = vmatpush3.bf16.msra.mxu1 %v2103_v18  ;;  %v63_v29 = vsub.s32 0, %v2347_v27  ;;  %v69_v31 = vsub.s32 1, %v2347_v27  ;;  %vm158_vm3 = vcmp.le.s32.totalorder %v157_v47, %v2347_v27  ;;  %s2262_s11 = smov 112   ;;  %s2263_s12 = smov 48  }
   0x7   :  { %38 = vadd.xlane.f32.xlu0 %v37_v3  ;;  %2108 = vmatprep.subr.bf16.mxu1 %v2107_v20  ;;  %v2385_v49 = vsel %vm158_vm3, 0.0, %v2256_v48  ;;  %s2264_s13 = smov 72   ;;  %s2265_s14 = smov 104  }
   0x8   :  { %v64_v32 = vrot.slane %v2353_v30, %v63_v29  ;;  %v70_v35 = vrot.slane %v2353_v30, %v69_v31  ;;  %s2266_s15 = smov 40   ;;  %s2267_s16 = smov 32  }
   0x9   :  { %s2268_s17 = smov 8   ;;  %s2269_s18 = smov 16  }
   0xa   :  { %2110 = vmatpush3.bf16.msra.mxu1 %v2107_v20  ;;  %s2270_s19 = smov 24  }
   0xb   :  { %1966 = vmatprep.subr.mxu1 %v2253_v42 }
  0x90   :  { %v36_v4 = vpop.xlane.xlu0 %35 }
  0x91   :  { %v41_v5 = vmul.f32 0.03125, %v36_v4 }
  0x93   :  { %v43_v6 = vsub.f32 %v2306_v0, %v41_v5 }
  0x94   :  { %v39_v7 = vpop.xlane.xlu0 %38 }
  0x95   :  { %v42_v8 = vmul.f32 0.03125, %v39_v7  ;;  %v45_v9 = vmul.f32 %v43_v6, %v43_v6 }
  0x97   :  { %v44_v10 = vsub.f32 %v2311_v1, %v42_v8  ;;  %v47_v11 = vsel %vm33_vm0, %v45_v9, 0.0 }
  0x98   :  { %48 = vadd.xlane.f32.xlu1 %v47_v11 }
  0x99   :  { %v46_v12 = vmul.f32 %v44_v10, %v44_v10 }
  0x9b   :  { %v50_v13 = vsel %vm33_vm0, %v46_v12, 0.0 }
  0x9c   :  { %51 = vadd.xlane.f32.xlu1 %v50_v13 }
 0x125   :  { %v49_v21 = vpop.xlane.xlu1 %48 }
 0x126   :  { %v53_v22 = vmul.f32 0.03125, %v49_v21 }
 0x128   :  { %v55_v24 = vadd.f32 1e-05, %v53_v22 }
 0x129   :  { %v52_v25 = vpop.xlane.xlu1 %51 }
 0x12a   :  { %2189 = vrsqrt.f32 %v55_v24  ;;  %v54_v26 = vmul.f32 0.03125, %v52_v25 }
 0x12c   :  { %v56_v28 = vadd.f32 1e-05, %v54_v26 }
 0x12e   :  { %2191 = vrsqrt.f32 %v56_v28 }
 0x134   :  { %v2190_v33 = vpop.eup %2189 }
 0x135   :  { %v59_v34 = vmul.f32 %v2190_v33, %v43_v6 }
 0x137   :  { %v65_v36 = vmul.f32 %v64_v32, %v59_v34 }
 0x138   :  { %v2192_v37 = vpop.eup %2191 }
 0x139   :  { %v60_v38 = vmul.f32 %v2192_v37, %v44_v10  ;;  %v71_v39 = vadd.f32 %v70_v35, %v65_v36 }
 0x13b   :  { %v66_v40 = vmul.f32 %v64_v32, %v60_v38  ;;  %1963 = vmatprep.mubr.msk.f32.mxu1 %vm33_vm0, %v71_v39 }
 0x13d   :  { %v72_v41 = vadd.f32 %v70_v35, %v66_v40 }
 0x13f   :  { %1964 = vmatmul.mubr.msk.f32.vlgmr.msra.gmra.mrb[0].mxu1 %vm33_vm0, %v72_v41 }
 0x140   :  { %1968 = vmatprep.mubr.msk.f32.mxu1 %vm2254_vm1, %v2253_v42 }
 0x212   :  { %v2366_v43 = vpop.f32.mrb[0].mxu1 }
 0x213   :  { %239 = vrot.lane.b32.xlu1 %v2366_v43, %s2255_s3  ;;  %v2369_v44 = vpop.f32.mrb[1].mxu1 }
 0x214   :  { %161 = vrot.lane.b32.xlu0 %v2369_v44, %s2255_s3 }
 0x285   :  { %v240_v46 = vpop.permute.xlu1 %239 }
 0x286   :  { %v162_v45 = vpop.permute.xlu0 %161 }
 0x287   :  { %1967 = vmatpush3.xpose.msk.msra.mxu1 %vm163_vm2, %v162_v45 }
 0x288   :  { %1971 = vmatprep.subr.mxu1 %v2253_v42 }
 0x28a   :  { %1969 = vmatmul.mubr.msk.f32.vlgmr.msra.gmra.mrb[2].mxu1 %vm163_vm2, %v2369_v44 }
 0x28b   :  { %1972 = vmatpush3.xpose.msk.msra.mxu1 %vm163_vm2, %v240_v46  ;;  %1973 = vmatprep.mubr.msk.f32.mxu1 %vm2254_vm1, %v2253_v42 }
 0x28c   :  { %1981 = vmatprep.subr.mxu1 %v2253_v42 }
 0x28e   :  { %1974 = vmatmul.mubr.msk.f32.vlgmr.msra.gmra.mrb[4].mxu1 %vm163_vm2, %v2366_v43 }
 0x28f   :  { %1983 = vmatprep.mubr.msk.f32.mxu1 %vm2254_vm1, %v2253_v42 }
 0x35d   :  { %v234_v50 = vpop.f32.mrb[2].mxu1 }
 0x35e   :  { %v235_v51 = vadd.f32 %v234_v50, %v2385_v49  ;;  %v1970_v52 = vpop.f32.mrb[3].mxu1 }
 0x360   :  { %v315_v53 = vsel %vm163_vm2, %v235_v51, -inf }
 0x361   :  { %316 = vmax.xlane.f32.xlu1 %v315_v53  ;;  %v311_v54 = vpop.f32.mrb[4].mxu1 }
 0x362   :  { %v312_v55 = vadd.f32 %v311_v54, %v2385_v49  ;;  %v1975_v56 = vpop.f32.mrb[5].mxu1 }
 0x364   :  { %v318_v57 = vsel %vm163_vm2, %v312_v55, -inf }
 0x365   :  { %319 = vmax.xlane.f32.xlu0 %v318_v57 }
 0x372   :  { %413 = vrot.lane.b32.xlu1 %v2366_v43, %s2257_s6 }
 0x376   :  { %491 = vrot.lane.b32.xlu1 %v2369_v44, %s2258_s7 }
 0x37a   :  { %569 = vrot.lane.b32.xlu1 %v2366_v43, %s2258_s7 }
 0x37b   :  { %337 = vrot.lane.b32.xlu0 %v2369_v44, %s2257_s6 }
 0x3ee   :  { %v317_v58 = vpop.xlane.xlu1 %316 }
 0x3ef   :  { %v321_v59 = vsub.f32 %v235_v51, %v317_v58 }
 0x3f1   :  { %v323_v60 = vmul.f32 1.442695, %v321_v59 }
 0x3f2   :  { %v414_v61 = vpop.permute.xlu1 %413  ;;  %v320_v62 = vpop.xlane.xlu0 %319 }
 0x3f3   :  { %2193 = vpow2.f32 %v323_v60  ;;  %v322_v63 = vsub.f32 %v312_v55, %v320_v62  ;;  %1982 = vmatpush3.msra.mxu1 %v414_v61 }
 0x3f4   :  { %1991 = vmatprep.subr.mxu1 %v2253_v42 }
 0x3f5   :  { %v325_v2 = vmul.f32 1.442695, %v322_v63 }
 0x3f6   :  { %v338_v3 = vpop.permute.xlu0 %337  ;;  %v492_v8 = vpop.permute.xlu1 %491 }
 0x3f7   :  { %2195 = vpow2.f32 %v325_v2  ;;  %1977 = vmatpush3.msra.mxu0 %v338_v3 }
 0x3f8   :  { %1986 = vmatprep.subr.mxu0 %v2253_v42 }
 0x3fa   :  { %v570_v9 = vpop.permute.xlu1 %569 }
 0x3fd   :  { %v2194_v4 = vpop.eup %2193 }
 0x3fe   :  { %v327_v5 = vsel %vm163_vm2, %v2194_v4, 0.0 }
 0x3ff   :  { %328 = vadd.xlane.f32.xlu0 %v327_v5 }
 0x401   :  { %v2196_v6 = vpop.eup %2195 }
 0x402   :  { %v330_v7 = vsel %vm163_vm2, %v2196_v6, 0.0 }
 0x403   :  { %331 = vadd.xlane.f32.xlu1 %v330_v7 }
 0x414   :  { %567 = vrot.lane.b32.xlu1 %v2366_v43, %s2259_s8 }
 0x415   :  { %489 = vrot.lane.b32.xlu0 %v2369_v44, %s2259_s8 }
 0x48c   :  { %v329_v10 = vpop.xlane.xlu0 %328 }
 0x48d   :  { %2197 = vrcp.f32 %v329_v10 }
 0x490   :  { %v332_v11 = vpop.xlane.xlu1 %331  ;;  %v490_v21 = vpop.permute.xlu0 %489 }
 0x491   :  { %2199 = vrcp.f32 %v332_v11 }
 0x494   :  { %v568_v22 = vpop.permute.xlu1 %567 }
 0x497   :  { %v2198_v12 = vpop.eup %2197 }
 0x498   :  { %v334_v13 = vmul.f32 %v2198_v12, %v2194_v4 }
 0x49a   :  { %1979 = vmatmul.mubr.msk.f32.vlgmr.msra.gmra.mrb[0].mxu0 %vm163_vm2, %v334_v13 }
 0x49b   :  { %v2200_v18 = vpop.eup %2199  ;;  %1987 = vmatpush3.xpose.msk.msra.mxu0 %vm163_vm2, %v492_v8  ;;  %1988 = vmatprep.mubr.msk.f32.mxu0 %vm2254_vm1, %v2253_v42 }
 0x49c   :  { %v336_v20 = vmul.f32 %v2200_v18, %v2196_v6  ;;  %1996 = vmatprep.subr.mxu0 %v2253_v42 }
 0x49e   :  { %1984 = vmatmul.mubr.msk.f32.vlgmr.msra.gmra.mrb[6].mxu1 %vm163_vm2, %v336_v20  ;;  %1989 = vmatmul.mubr.msk.f32.vlgmr.msra.gmra.mrb[2].mxu0 %vm163_vm2, %v490_v21 }
 0x49f   :  { %1992 = vmatpush3.xpose.msk.msra.mxu1 %vm163_vm2, %v570_v9  ;;  %1993 = vmatprep.mubr.msk.f32.mxu1 %vm2254_vm1, %v2253_v42 }
 0x4a0   :  { %2001 = vmatprep.subr.mxu1 %v2253_v42  ;;  %1998 = vmatprep.mubr.msk.f32.mxu0 %vm2254_vm1, %v2253_v42 }
 0x4a2   :  { %1994 = vmatmul.mubr.msk.f32.vlgmr.msra.gmra.mrb[8].mxu1 %vm163_vm2, %v568_v22 }
 0x4a3   :  { %2003 = vmatprep.mubr.msk.f32.mxu1 %vm2254_vm1, %v2253_v42 }
 0x56d   :  { %v2417_v23 = vpop.f32.mrb[0].mxu0 }
 0x56e   :  { %v1980_v24 = vpop.f32.mrb[1].mxu0 }
 0x571   :  { %v2419_v25 = vpop.f32.mrb[6].mxu1  ;;  %v563_v26 = vpop.f32.mrb[2].mxu0 }
 0x572   :  { %v564_v28 = vadd.f32 %v563_v26, %v2385_v49  ;;  %v1985_v29 = vpop.f32.mrb[7].mxu1  ;;  %v1990_v31 = vpop.f32.mrb[3].mxu0 }
 0x574   :  { %v645_v32 = vsel %vm163_vm2, %v564_v28, -inf }
 0x575   :  { %646 = vmax.xlane.f32.xlu0 %v645_v32  ;;  %v641_v33 = vpop.f32.mrb[8].mxu1 }
 0x576   :  { %v642_v34 = vadd.f32 %v641_v33, %v2385_v49  ;;  %v1995_v35 = vpop.f32.mrb[9].mxu1 }
 0x578   :  { %v648_v36 = vsel %vm163_vm2, %v642_v34, -inf }
 0x579   :  { %649 = vmax.xlane.f32.xlu1 %v648_v36 }
 0x58a   :  { %743 = vrot.lane.b32.xlu1 %v2366_v43, %s2260_s9 }
 0x58b   :  { %667 = vrot.lane.b32.xlu0 %v2369_v44, %s2260_s9 }
 0x58e   :  { %821 = vrot.lane.b32.xlu1 %v2369_v44, %s2261_s10 }
 0x592   :  { %899 = vrot.lane.b32.xlu1 %v2366_v43, %s2261_s10 }
 0x596   :  { %897 = vrot.lane.b32.xlu1 %v2366_v43, %s2262_s11 }
 0x602   :  { %v647_v37 = vpop.xlane.xlu0 %646 }
 0x603   :  { %v651_v38 = vsub.f32 %v564_v28, %v647_v37 }
 0x605   :  { %v653_v39 = vmul.f32 1.442695, %v651_v38 }
 0x606   :  { %v668_v40 = vpop.permute.xlu0 %667  ;;  %v650_v41 = vpop.xlane.xlu1 %649 }
 0x607   :  { %2201 = vpow2.f32 %v653_v39  ;;  %v652_v45 = vsub.f32 %v642_v34, %v650_v41  ;;  %1997 = vmatpush3.msra.mxu0 %v668_v40 }
 0x608   :  { %2006 = vmatprep.subr.mxu0 %v2253_v42 }
 0x609   :  { %v655_v46 = vmul.f32 1.442695, %v652_v45 }
 0x60a   :  { %v744_v47 = vpop.permute.xlu1 %743 }
 0x60b   :  { %2203 = vpow2.f32 %v655_v46  ;;  %2002 = vmatpush3.msra.mxu1 %v744_v47 }
 0x60c   :  { %2011 = vmatprep.subr.mxu1 %v2253_v42 }
 0x60e   :  { %v822_v55 = vpop.permute.xlu1 %821 }
 0x611   :  { %v2202_v48 = vpop.eup %2201 }
 0x612   :  { %v657_v50 = vsel %vm163_vm2, %v2202_v48, 0.0  ;;  %v900_v59 = vpop.permute.xlu1 %899 }
 0x613   :  { %658 = vadd.xlane.f32.xlu0 %v657_v50 }
 0x615   :  { %v2204_v51 = vpop.eup %2203 }
 0x616   :  { %v660_v52 = vsel %vm163_vm2, %v2204_v51, 0.0  ;;  %v898_v62 = vpop.permute.xlu1 %897 }
 0x617   :  { %661 = vadd.xlane.f32.xlu0 %v660_v52 }
 0x62d   :  { %819 = vrot.lane.b32.xlu0 %v2369_v44, %s2262_s11 }
 0x6a0   :  { %v659_v53 = vpop.xlane.xlu0 %658 }
 0x6a1   :  { %2205 = vrcp.f32 %v659_v53 }
 0x6a4   :  { %v662_v54 = vpop.xlane.xlu0 %661 }
 0x6a5   :  { %2207 = vrcp.f32 %v662_v54 }
 0x6a8   :  { %v820_v61 = vpop.permute.xlu0 %819 }
 0x6ab   :  { %v2206_v56 = vpop.eup %2205 }
 0x6ac   :  { %v664_v57 = vmul.f32 %v2206_v56, %v2202_v48 }
 0x6ae   :  { %1999 = vmatmul.mubr.msk.f32.vlgmr.msra.gmra.mrb[4].mxu0 %vm163_vm2, %v664_v57 }
 0x6af   :  { %v2208_v58 = vpop.eup %2207  ;;  %2007 = vmatpush3.xpose.msk.msra.mxu0 %vm163_vm2, %v822_v55  ;;  %2008 = vmatprep.mubr.msk.f32.mxu0 %vm2254_vm1, %v2253_v42 }
 0x6b0   :  { %v666_v60 = vmul.f32 %v2208_v58, %v2204_v51  ;;  %2016 = vmatprep.subr.mxu0 %v2253_v42 }
 0x6b2   :  { %2004 = vmatmul.mubr.msk.f32.vlgmr.msra.gmra.mrb[10].mxu1 %vm163_vm2, %v666_v60  ;;  %2009 = vmatmul.mubr.msk.f32.vlgmr.msra.gmra.mrb[6].mxu0 %vm163_vm2, %v820_v61 }
 0x6b3   :  { %2012 = vmatpush3.xpose.msk.msra.mxu1 %vm163_vm2, %v900_v59  ;;  %2013 = vmatprep.mubr.msk.f32.mxu1 %vm2254_vm1, %v2253_v42 }
 0x6b4   :  { %2021 = vmatprep.subr.mxu1 %v2253_v42  ;;  %2018 = vmatprep.mubr.msk.f32.mxu0 %vm2254_vm1, %v2253_v42 }
 0x6b6   :  { %2014 = vmatmul.mubr.msk.f32.vlgmr.msra.gmra.mrb[12].mxu1 %vm163_vm2, %v898_v62 }
 0x6b7   :  { %2023 = vmatprep.mubr.msk.f32.mxu1 %vm2254_vm1, %v2253_v42 }
 0x781   :  { %v2451_v63 = vpop.f32.mrb[4].mxu0 }
 0x782   :  { %v2000_v2 = vpop.f32.mrb[5].mxu0 }
 0x785   :  { %v2453_v3 = vpop.f32.mrb[10].mxu1  ;;  %v893_v4 = vpop.f32.mrb[6].mxu0 }
 0x786   :  { %v894_v5 = vadd.f32 %v893_v4, %v2385_v49  ;;  %v2005_v6 = vpop.f32.mrb[11].mxu1  ;;  %v2010_v7 = vpop.f32.mrb[7].mxu0 }
 0x788   :  { %v975_v8 = vsel %vm163_vm2, %v894_v5, -inf }
 0x789   :  { %976 = vmax.xlane.f32.xlu0 %v975_v8  ;;  %v971_v9 = vpop.f32.mrb[12].mxu1 }
 0x78a   :  { %v972_v10 = vadd.f32 %v971_v9, %v2385_v49  ;;  %v2015_v11 = vpop.f32.mrb[13].mxu1 }
 0x78c   :  { %v978_v12 = vsel %vm163_vm2, %v972_v10, -inf }
 0x78d   :  { %979 = vmax.xlane.f32.xlu1 %v978_v12 }
 0x79e   :  { %1073 = vrot.lane.b32.xlu1 %v2366_v43, %s2263_s12 }
 0x79f   :  { %997 = vrot.lane.b32.xlu0 %v2369_v44, %s2263_s12 }
 0x7a2   :  { %1151 = vrot.lane.b32.xlu1 %v2369_v44, %s2264_s13 }
 0x7a6   :  { %1229 = vrot.lane.b32.xlu1 %v2366_v43, %s2264_s13 }
 0x7aa   :  { %1227 = vrot.lane.b32.xlu1 %v2366_v43, %s2265_s14 }
 0x816   :  { %v977_v13 = vpop.xlane.xlu0 %976 }
 0x817   :  { %v981_v18 = vsub.f32 %v894_v5, %v977_v13 }
 0x819   :  { %v983_v20 = vmul.f32 1.442695, %v981_v18 }
 0x81a   :  { %v998_v21 = vpop.permute.xlu0 %997  ;;  %v980_v22 = vpop.xlane.xlu1 %979 }
 0x81b   :  { %2209 = vpow2.f32 %v983_v20  ;;  %v982_v24 = vsub.f32 %v972_v10, %v980_v22  ;;  %2017 = vmatpush3.msra.mxu0 %v998_v21 }
 0x81c   :  { %2026 = vmatprep.subr.mxu0 %v2253_v42 }
 0x81d   :  { %v985_v26 = vmul.f32 1.442695, %v982_v24 }
 0x81e   :  { %v1074_v28 = vpop.permute.xlu1 %1073 }
 0x81f   :  { %2211 = vpow2.f32 %v985_v26  ;;  %2022 = vmatpush3.msra.mxu1 %v1074_v28 }
 0x820   :  { %2031 = vmatprep.subr.mxu1 %v2253_v42 }
 0x822   :  { %v1152_v36 = vpop.permute.xlu1 %1151 }
 0x825   :  { %v2210_v29 = vpop.eup %2209 }
 0x826   :  { %v987_v31 = vsel %vm163_vm2, %v2210_v29, 0.0  ;;  %v1230_v40 = vpop.permute.xlu1 %1229 }
 0x827   :  { %988 = vadd.xlane.f32.xlu0 %v987_v31 }
 0x829   :  { %v2212_v32 = vpop.eup %2211 }
 0x82a   :  { %v990_v33 = vsel %vm163_vm2, %v2212_v32, 0.0  ;;  %v1228_v46 = vpop.permute.xlu1 %1227 }
 0x82b   :  { %991 = vadd.xlane.f32.xlu0 %v990_v33 }
 0x841   :  { %1149 = vrot.lane.b32.xlu0 %v2369_v44, %s2265_s14 }
 0x8b4   :  { %v989_v34 = vpop.xlane.xlu0 %988 }
 0x8b5   :  { %2213 = vrcp.f32 %v989_v34 }
 0x8b8   :  { %v992_v35 = vpop.xlane.xlu0 %991 }
 0x8b9   :  { %2215 = vrcp.f32 %v992_v35 }
 0x8bc   :  { %v1150_v45 = vpop.permute.xlu0 %1149 }
 0x8bf   :  { %v2214_v37 = vpop.eup %2213 }
 0x8c0   :  { %v994_v38 = vmul.f32 %v2214_v37, %v2210_v29 }
 0x8c2   :  { %2019 = vmatmul.mubr.msk.f32.vlgmr.msra.gmra.mrb[8].mxu0 %vm163_vm2, %v994_v38 }
 0x8c3   :  { %v2216_v39 = vpop.eup %2215  ;;  %2027 = vmatpush3.xpose.msk.msra.mxu0 %vm163_vm2, %v1152_v36  ;;  %2028 = vmatprep.mubr.msk.f32.mxu0 %vm2254_vm1, %v2253_v42 }
 0x8c4   :  { %v996_v41 = vmul.f32 %v2216_v39, %v2212_v32  ;;  %2036 = vmatprep.subr.mxu0 %v2253_v42 }
 0x8c6   :  { %2024 = vmatmul.mubr.msk.f32.vlgmr.msra.gmra.mrb[14].mxu1 %vm163_vm2, %v996_v41  ;;  %2029 = vmatmul.mubr.msk.f32.vlgmr.msra.gmra.mrb[10].mxu0 %vm163_vm2, %v1150_v45  ;;  %v1513_v41 = vsub.s32 4, %v2347_v27 }
 0x8c7   :  { %2032 = vmatpush3.xpose.msk.msra.mxu1 %vm163_vm2, %v1230_v40  ;;  %2033 = vmatprep.mubr.msk.f32.mxu1 %vm2254_vm1, %v2253_v42 }
 0x8c8   :  { %2041 = vmatprep.subr.mxu1 %v2253_v42  ;;  %2038 = vmatprep.mubr.msk.f32.mxu0 %vm2254_vm1, %v2253_v42  ;;  %v1514_v45 = vrot.slane %v2353_v30, %v1513_v41 }
 0x8ca   :  { %2034 = vmatmul.mubr.msk.f32.vlgmr.msra.gmra.mrb[16].mxu1 %vm163_vm2, %v1228_v46 }
 0x8cb   :  { %2043 = vmatprep.mubr.msk.f32.mxu1 %vm2254_vm1, %v2253_v42  ;;  %v2184_v42 = vpack.i.bf16 %v2343_v19, %v2334_v16 }
 0x995   :  { %v1069_v47 = vpop.f32.mrb[8].mxu0 }
 0x996   :  { %v2020_v48 = vpop.f32.mrb[9].mxu0 }
 0x999   :  { %v1145_v50 = vpop.f32.mrb[14].mxu1  ;;  %v1223_v51 = vpop.f32.mrb[10].mxu0 }
 0x99a   :  { %v1224_v52 = vadd.f32 %v1223_v51, %v2385_v49  ;;  %v2025_v53 = vpop.f32.mrb[15].mxu1  ;;  %v2030_v54 = vpop.f32.mrb[11].mxu0 }
 0x99c   :  { %v1305_v55 = vsel %vm163_vm2, %v1224_v52, -inf }
 0x99d   :  { %1306 = vmax.xlane.f32.xlu0 %v1305_v55  ;;  %v1301_v56 = vpop.f32.mrb[16].mxu1 }
 0x99e   :  { %v1302_v57 = vadd.f32 %v1301_v56, %v2385_v49  ;;  %v2035_v58 = vpop.f32.mrb[17].mxu1 }
 0x9a0   :  { %v1308_v59 = vsel %vm163_vm2, %v1302_v57, -inf }
 0x9a1   :  { %1309 = vmax.xlane.f32.xlu1 %v1308_v59 }
 0x9b2   :  { %1403 = vrot.lane.b32.xlu1 %v2366_v43, %s2266_s15 }
 0x9b6   :  { %2180 = vrot.lane.b32.xlu1 %v2179_v17, %s2267_s16 }
 0x9ba   :  { %2185 = vrot.lane.b32.xlu1 %v2184_v42, %s2267_s16 }
 0x9be   :  { %1483 = vrot.lane.b32.xlu1 %v2453_v3, %s2268_s17 }
 0x9c2   :  { %1491 = vrot.lane.b32.xlu1 %v1145_v50, %s2269_s18 }
 0xa2a   :  { %v1307_v49 = vpop.xlane.xlu0 %1306 }
 0xa2b   :  { %v1311_v60 = vsub.f32 %v1224_v52, %v1307_v49  ;;  %v24_v49 = vld [vmem:[%s2627_s1 + $0x8] sm:$0xff] }
 0xa2d   :  { %v1313_v61 = vmul.f32 1.442695, %v1311_v60  ;;  %v26_v60 = vld [vmem:[%s2627_s1 + $0x18] sm:$0xff] }
 0xa2e   :  { %v1310_v62 = vpop.xlane.xlu1 %1309 }
 0xa2f   :  { %2217 = vpow2.f32 %v1313_v61  ;;  %v1312_v43 = vsub.f32 %v1302_v57, %v1310_v62  ;;  %v2119_v61 = vpack.c.bf16 %v26_v60, %v24_v49  ;;  %v28_v62 = vld [vmem:[%s2627_s1 + $0x28] sm:$0xff] }
 0xa31   :  { %v1315_v2 = vmul.f32 1.442695, %v1312_v43  ;;  %v30_v43 = vld [vmem:[%s2627_s1 + $0x38] sm:$0xff] }
 0xa32   :  { %v1404_v4 = vpop.permute.xlu1 %1403 }
 0xa33   :  { %2219 = vpow2.f32 %v1315_v2  ;;  %2042 = vmatpush3.msra.mxu1 %v1404_v4  ;;  %v2123_v2 = vpack.c.bf16 %v30_v43, %v28_v62  ;;  %v1741_v4 = vld [vmem:[%s2628_s2] sm:$0xff] }
 0xa36   :  { %v2181_v14 = vpop.permute.xlu1 %2180 }
 0xa37   :  { %v2183_v15 = vunpack.i.h.bf16 %v2181_v14  ;;  %v2182_v16 = vunpack.i.l.bf16 %v2181_v14  ;;  %v1742_v14 = vld [vmem:[%s2628_s2 + $0x8] sm:$0xff] }
 0xa39   :  { %v2218_v17 = vpop.eup %2217  ;;  %v2111_v19 = vpack.c.bf16 %v2183_v15, %v2182_v16  ;;  %v1743_v15 = vld [vmem:[%s2628_s2 + $0x10] sm:$0xff]  ;;  %v2127_v16 = vpack.c.bf16 %v1742_v14, %v1741_v4 }
 0xa3a   :  { %v1317_v5 = vsel %vm163_vm2, %v2218_v17, 0.0  ;;  %v2186_v11 = vpop.permute.xlu1 %2185 }
 0xa3b   :  { %1318 = vadd.xlane.f32.xlu0 %v1317_v5  ;;  %2112 = vmatprep.subr.bf16.mxu1 %v2111_v19  ;;  %v2188_v12 = vunpack.i.h.bf16 %v2186_v11  ;;  %v2187_v13 = vunpack.i.l.bf16 %v2186_v11  ;;  %v1745_v5 = vld [vmem:[%s2628_s2 + $0x20] sm:$0xff]  ;;  %v1750_v11 = vld [vmem:[%s2628_s2 + $0x48] sm:$0xff] }
 0xa3d   :  { %v2220_v3 = vpop.eup %2219  ;;  %v2115_v21 = vpack.c.bf16 %v2188_v12, %v2187_v13  ;;  %v1751_v13 = vld [vmem:[%s2628_s2 + $0x50] sm:$0xff] }
 0xa3e   :  { %v1320_v6 = vsel %vm163_vm2, %v2220_v3, 0.0  ;;  %v1484_v29 = vpop.permute.xlu1 %1483 }
 0xa3f   :  { %1321 = vadd.xlane.f32.xlu0 %v1320_v6  ;;  %v1504_v37 = vsel %vm163_vm2, %v2419_v25, %v1484_v29 }
 0xa42   :  { %v1492_v33 = vpop.permute.xlu1 %1491 }
 0xa43   :  { %v1507_v38 = vsel %vm1505_vm5, %v1504_v37, %v1492_v33  ;;  %v1648_v33 = vsub.s32 3, %v2347_v27 }
 0xa45   :  { %v1649_v37 = vrot.slane %v2353_v30, %v1648_v33 }
 0xa55   :  { %1327 = vrot.lane.b32.xlu0 %v2369_v44, %s2266_s15 }
 0xa59   :  { %1481 = vrot.lane.b32.xlu0 %v2451_v63, %s2268_s17 }
 0xa5d   :  { %1489 = vrot.lane.b32.xlu0 %v1069_v47, %s2269_s18 }
 0xac8   :  { %v1319_v7 = vpop.xlane.xlu0 %1318 }
 0xac9   :  { %2221 = vrcp.f32 %v1319_v7  ;;  %v1747_v7 = vld [vmem:[%s2628_s2 + $0x30] sm:$0xff] }
 0xacc   :  { %v1322_v8 = vpop.xlane.xlu0 %1321 }
 0xacd   :  { %2223 = vrcp.f32 %v1322_v8  ;;  %v1748_v8 = vld [vmem:[%s2628_s2 + $0x38] sm:$0xff] }
 0xad0   :  { %v1328_v9 = vpop.permute.xlu0 %1327 }
 0xad1   :  { %2037 = vmatpush3.msra.mxu0 %v1328_v9  ;;  %v2139_v9 = vpack.c.bf16 %v1748_v8, %v1747_v7 }
 0xad2   :  { %2128 = vmatprep.subr.bf16.mxu0 %v2127_v16 }
 0xad3   :  { %v2222_v10 = vpop.eup %2221 }
 0xad4   :  { %v1324_v18 = vmul.f32 %v2222_v10, %v2218_v17  ;;  %v1482_v28 = vpop.permute.xlu0 %1481  ;;  %v1744_v17 = vld [vmem:[%s2628_s2 + $0x18] sm:$0xff]  ;;  %v1749_v10 = vld [vmem:[%s2628_s2 + $0x40] sm:$0xff] }
 0xad5   :  { %v1503_v32 = vsel %vm163_vm2, %v2417_v23, %v1482_v28  ;;  %v2143_v12 = vpack.c.bf16 %v1750_v11, %v1749_v10 }
 0xad6   :  { %2039 = vmatmul.mubr.msk.f32.vlgmr.msra.gmra.mrb[12].mxu0 %vm163_vm2, %v1324_v18  ;;  %v1752_v18 = vld [vmem:[%s2628_s2 + $0x58] sm:$0xff] }
 0xad7   :  { %v2224_v20 = vpop.eup %2223  ;;  %2130 = vmatpush3.bf16.msra.mxu0 %v2127_v16 }
 0xad8   :  { %v1326_v44 = vmul.f32 %v2224_v20, %v2220_v3  ;;  %v1490_v31 = vpop.permute.xlu0 %1489  ;;  %v1746_v3 = vld [vmem:[%s2628_s2 + $0x28] sm:$0xff]  ;;  %v2147_v20 = vpack.c.bf16 %v1752_v18, %v1751_v13 }
 0xad9   :  { %v1506_v34 = vsel %vm1505_vm5, %v1503_v32, %v1490_v31  ;;  %v2135_v6 = vpack.c.bf16 %v1746_v3, %v1745_v5  ;;  %v1642_v32 = vsub.s32 2, %v2347_v27 }
 0xada   :  { %2044 = vmatmul.mubr.msk.f32.vlgmr.msra.gmra.mrb[18].mxu1 %vm163_vm2, %v1326_v44  ;;  %v1754_v44 = vld [vmem:[%s2628_s2 + $0x68] sm:$0xff] }
 0xadb   :  { %2114 = vmatpush3.bf16.msra.mxu1 %v2111_v19  ;;  %v2131_v19 = vpack.c.bf16 %v1744_v17, %v1743_v15 }
 0xadc   :  { %2116 = vmatprep.subr.bf16.mxu1 %v2115_v21 }
 0xadd   :  { %2132 = vmatprep.subr.bf16.mxu0 %v2131_v19 }
 0xade   :  { %2134 = vmatpush3.bf16.msra.mxu0 %v2131_v19 }
 0xadf   :  { %2118 = vmatpush3.bf16.msra.mxu1 %v2115_v21  ;;  %2136 = vmatprep.subr.bf16.mxu0 %v2135_v6  ;;  %v1753_v21 = vld [vmem:[%s2628_s2 + $0x60] sm:$0xff] }
 0xae0   :  { %2120 = vmatprep.subr.bf16.mxu1 %v2119_v61 }
 0xae2   :  { %2138 = vmatpush3.bf16.msra.mxu0 %v2135_v6 }
 0xae3   :  { %2140 = vmatprep.subr.bf16.mxu0 %v2139_v9 }
 0xae6   :  { %2142 = vmatpush3.bf16.msra.mxu0 %v2139_v9 }
 0xae7   :  { %2144 = vmatprep.subr.bf16.mxu0 %v2143_v12 }
 0xaea   :  { %2146 = vmatpush3.bf16.msra.mxu0 %v2143_v12 }
 0xaeb   :  { %2148 = vmatprep.subr.bf16.mxu0 %v2147_v20 }
 0xaee   :  { %2150 = vmatpush3.bf16.msra.mxu0 %v2147_v20 }
 0xba9   :  { %v1399_v63 = vpop.f32.mrb[12].mxu0 }
 0xbaa   :  { %1497 = vrot.lane.b32.xlu0 %v1399_v63, %s2270_s19  ;;  %v2040_v22 = vpop.f32.mrb[13].mxu0  ;;  %v2151_v63 = vpack.c.bf16 %v1754_v44, %v1753_v21 }
 0xbac   :  { %2152 = vmatprep.subr.bf16.mxu0 %v2151_v63 }
 0xbad   :  { %v1475_v24 = vpop.f32.mrb[18].mxu1  ;;  %2154 = vmatpush3.bf16.msra.mxu0 %v2151_v63 }
 0xbae   :  { %1499 = vrot.lane.b32.xlu1 %v1475_v24, %s2270_s19  ;;  %v2045_v26 = vpop.f32.mrb[19].mxu1 }
 0xc1c   :  { %v1498_v35 = vpop.permute.xlu0 %1497 }
 0xc1d   :  { %v1509_v36 = vsel %vm1508_vm4, %v1506_v34, %v1498_v35  ;;  %v1643_v34 = vrot.slane %v2353_v30, %v1642_v32 }
 0xc1e   :  { %2054 = vmatprep.mubr.msk.f32.mxu1 %vm33_vm0, %v1509_v36 }
 0xc20   :  { %v1500_v39 = vpop.permute.xlu1 %1499 }
 0xc21   :  { %v1510_v40 = vsel %vm1508_vm4, %v1507_v38, %v1500_v39 }
 0xc22   :  { %2055 = vmatmul.mubr.msk.f32.vlgmr.msra.gmra.mrb[20].mxu1 %vm33_vm0, %v1510_v40 }
 0xc23   :  { %2122 = vmatpush3.bf16.msra.mxu1 %v2119_v61 }
 0xc24   :  { %2124 = vmatprep.subr.bf16.mxu1 %v2123_v2 }
 0xc27   :  { %2126 = vmatpush3.bf16.msra.mxu1 %v2123_v2 }
 0xcf5   :  { %v2056_v46 = vpop.f32.mrb[20].mxu1 }
 0xcf6   :  { %v1609_v23 = vadd.f32 %v2056_v46, %v1514_v45  ;;  %v1603_v47 = vpop.f32.mrb[21].mxu1 }
 0xcf7   :  { %v1604_v48 = vadd.f32 %v1603_v47, %v1514_v45  ;;  %v1756_v47 = vld [vmem:[%s2628_s2 + $0x78] sm:$0xff] }
 0xcf8   :  { %v2515_v50 = vadd.f32 %v1609_v23, %v2311_v1  ;;  %v1755_v23 = vld [vmem:[%s2628_s2 + $0x70] sm:$0xff]  ;;  %s2271_s2 = smov [#allocation2]  }
 0xcf9   :  { %v2518_v51 = vadd.f32 %v1604_v48, %v2306_v0  ;;  %v2155_v48 = vpack.c.bf16 %v1756_v47, %v1755_v23  ;;  %s1845_s8 = sshll.u32 %s2271_s2, 4  ;;  %s1846_s8 = int_to_ptr.vmem [resolvable:$true] %s1845_s8 }
 0xcfa   :  { %v1617_v25 = vsel %vm33_vm0, %v2515_v50, 0.0  ;;  %p2234_p1 = scmp.lt.s32.totalorder %s1846_s8, %s1846_s8 }
 0xcfb   :  { %1618 = vadd.xlane.f32.xlu1 %v1617_v25  ;;  %v1614_v52 = vsel %vm33_vm0, %v2518_v51, 0.0  ;;  %2156 = vmatprep.subr.bf16.mxu0 %v2155_v48  ;;  %v1884_v25 = vld [vmem:[%s2630_s4] ss:$0 sm:$0xff]  ;;  %s2229_s4 = scalar_lea.vmem %s1846_s8, 256 }
 0xcfc   :  { %1615 = vadd.xlane.f32.xlu0 %v1614_v52  ;;  %2158 = vmatpush3.bf16.msra.mxu0 %v2155_v48  ;;  %p2230_p0 = scmp.ne.s32.totalorder %s1846_s8, %s2229_s4  ;;  %p2235_p2 = scmp.lt.s32.totalorder %s2229_s4, %s2229_s4 }
 0xcfe   :  { %p2236_p3 = por %p2235_p2, %p2234_p1 }
 0xd00   :  { %p2237_p4 = pnand %p2236_p3, %p2230_p0 }
 0xd88   :  { %v1619_v53 = vpop.xlane.xlu1 %1618 }
 0xd89   :  { %v1621_v54 = vmul.f32 0.03125, %v1619_v53  ;;  %v1616_v55 = vpop.xlane.xlu0 %1615 }
 0xd8a   :  { %v1620_v56 = vmul.f32 0.03125, %v1616_v55 }
 0xd8b   :  { %v2525_v57 = vsub.f32 %v2515_v50, %v1621_v54 }
 0xd8c   :  { %v2528_v1 = vsub.f32 %v2518_v51, %v1620_v56 }
 0xd8d   :  { %v1625_v59 = vmul.f32 %v2525_v57, %v2525_v57 }
 0xd8e   :  { %v1624_v0 = vmul.f32 %v2528_v1, %v2528_v1 }
 0xd8f   :  { %v1629_v42 = vsel %vm33_vm0, %v1625_v59, 0.0 }
 0xd90   :  { %v1626_v58 = vsel %vm33_vm0, %v1624_v0, 0.0 }
 0xd91   :  { %1627 = vadd.xlane.f32.xlu0 %v1626_v58 }
 0xd95   :  { %1630 = vadd.xlane.f32.xlu0 %v1629_v42 }
 0xe1e   :  { %v1628_v22 = vpop.xlane.xlu0 %1627 }
 0xe1f   :  { %v1632_v24 = vmul.f32 0.03125, %v1628_v22 }
 0xe21   :  { %v1634_v26 = vadd.f32 1e-05, %v1632_v24 }
 0xe22   :  { %v1631_v28 = vpop.xlane.xlu0 %1630 }
 0xe23   :  { %2225 = vrsqrt.f32 %v1634_v26  ;;  %v1633_v29 = vmul.f32 0.03125, %v1631_v28 }
 0xe25   :  { %v1635_v31 = vadd.f32 1e-05, %v1633_v29 }
 0xe27   :  { %2227 = vrsqrt.f32 %v1635_v31 }
 0xe2d   :  { %v2226_v35 = vpop.eup %2225 }
 0xe2e   :  { %v1638_v36 = vmul.f32 %v2226_v35, %v2528_v1  ;;  %v1759_v1 = vsub.s32 5, %v2347_v27 }
 0xe30   :  { %v1644_v38 = vmul.f32 %v1643_v34, %v1638_v36  ;;  %v1760_v0 = vrot.slane %v2353_v30, %v1759_v1 }
 0xe31   :  { %v2228_v39 = vpop.eup %2227 }
 0xe32   :  { %v1639_v40 = vmul.f32 %v2228_v39, %v2525_v57  ;;  %v1650_v41 = vadd.f32 %v1649_v37, %v1644_v38 }
 0xe34   :  { %v1645_v45 = vmul.f32 %v1643_v34, %v1639_v40  ;;  %2065 = vmatprep.mubr.msk.f32.mxu1 %vm33_vm0, %v1650_v41 }
 0xe36   :  { %v1651_v46 = vadd.f32 %v1649_v37, %v1645_v45 }
 0xe38   :  { %2066 = vmatmul.mubr.msk.f32.vlgmr.msra.gmra.mrb[22].mxu1 %vm33_vm0, %v1651_v46 }
 0xf0b   :  { %v2067_v52 = vpop.f32.mrb[22].mxu1 }
 0xf0c   :  { %v1736_v53 = vadd.f32 %v2067_v52, %v1884_v25  ;;  %v1730_v54 = vpop.f32.mrb[23].mxu1 }
 0xf0d   :  { %v1731_v55 = vadd.f32 %v1884_v25, %v1730_v54 }
 0xf0e   :  { %v1740_v57 = vmax.f32 %v1736_v53, 0.0 }
 0xf0f   :  { %v1739_v56 = vmax.f32 %v1731_v55, 0.0 }
 0xf11   :  { %2100 = vmatprep.mubr.f32.mxu0 %v1739_v56 }
 0xf12   :  { %2101 = vmatmul.mubr.f32.vlgmr.msra.gmra.mrb[14].mxu0 %v1740_v57 }
 0xfe5   :  { %v2102_v58 = vpop.f32.mrb[14].mxu0 }
 0xfe6   :  { %v1833_v59 = vadd.f32 %v2102_v58, %v1760_v0  ;;  %v1827_v42 = vpop.f32.mrb[15].mxu0 }
 0xfe7   :  { %v1828_v49 = vadd.f32 %v1827_v42, %v1760_v0 }
 0xfe8   :  { %v1837_v60 = vadd.f32 %v1833_v59, %v2515_v50 }
 0xfe9   :  { %v1836_v61 = vadd.f32 %v1828_v49, %v2518_v51 }
 0xfea   :  { %1839 = vst.msk [vmem:[#allocation2 + $0x8] sm:$0xff] %vm33_vm0, %v1837_v60 }
 0xfeb   :  { %1838 = vst.msk [vmem:[#allocation2] sm:$0xff] %vm33_vm0, %v1836_v61 }
 0xfec   :  { %2240 = shalt.err (!%p2237_p4)
}
 0xfed   :  { %s2241_s10 = scalar_lea.hbm %s2631_s5, 256 }
 0xfee   :  { %p2242_p5 = scmp.ne.s32.totalorder %s2631_s5, %s2241_s10  ;;  %p2245_p6 = scmp.lt.u32.totalorder %s2241_s10, %s2631_s5 }
 0xff0   :  { %p2247_p7 = pnand %p2245_p6, %p2242_p5 }
 0xff2   :  { %2250 = shalt.err (!%p2247_p7)
}
 0xff3   :  { %s2272_s15 = smov 128  }
 0xff4   :  { %1851 = dma.vmem_to_hbm [thread:$0]  %s1846_s8, 256, %s2631_s5, [#allocation3], %s2272_s15, %s2272_s15, %s2268_s17  }
 0xff5   :  { %2251 = dma.done.wait [#allocation3], 256  }
 0xff6   :  { %2252 = vsyncadd [#allocation3], 4294967040 }
 0xff7   :  { %1855 = vsyncpa [#allocation3], 1 }

</bundles_post_ra>
